<compile_context>
chip_gen: v7x
topology: tpu7x:2x2x1
jax: 0.10.0
libtpu: 0.0.40
codegen_flags: <defaults>
</compile_context>

<pallas_src>
import math

import jax
import jax.numpy as jnp
from jax.experimental import pallas as pl
from jax.experimental.pallas import tpu as pltpu

# ---- model hyper-parameters ----
HID_DIM = 32
N_HEADS = 4
HEAD_DIM = HID_DIM // N_HEADS
PF_DIM = 64
LN_EPS = 1e-5  # PyTorch nn.LayerNorm default

VEC_W = 128  # lane width of the packed bias/LN table
# rows of the packed vector table
ROW_BQKV = 0    # width 3*HID_DIM, head-major ([bq_h/scale | bk_h | bv_h] per head)
ROW_B1 = 1      # width PF_DIM
ROW_BO = 2      # width HID_DIM
ROW_LN1_G = 3
ROW_LN1_B = 4
ROW_B2 = 5
ROW_LN2_G = 6
ROW_LN2_B = 7


def encoder_layer_kernel(src_ref, mask_ref, wqkv_ref, wo_ref, w1_ref, w2_ref,
                         vec_ref, out_ref, ctx_ref):
    """One grid step == one batch element. src_ref/out_ref are [S, H]."""
    S = src_ref.shape[0]
    H, nH, hd = HID_DIM, N_HEADS, HEAD_DIM
    mm_dtype = wqkv_ref.dtype   # f32, or bf16 for the v6e/v7x MXU-operand path

    x = src_ref[...].astype(jnp.float32)                       # [S, H]

    # ---- fused QKV projection (head-major; 1/sqrt(hd) folded into Q) ----
    qkv = jnp.dot(x.astype(mm_dtype), wqkv_ref[...],
                  preferred_element_type=jnp.float32)
    qkv = qkv + vec_ref[ROW_BQKV, :3 * H]                      # [S, 3H] f32

    # additive key-mask row ([1, S]); broadcast inside the add — never
    # materialized to [S, S].
    bias = jnp.where(mask_ref[...] == 0.0,
                     jnp.float32(-1e10), jnp.float32(0.0))     # [1, S]

    # ---- multi-head self attention ----
    # Each head's context goes straight into its 8-lane slice of a [S, H]
    # VMEM scratch; the output projection is then ONE K=H matmul.
    for h in range(nH):
        blk = qkv[:, 3 * hd * h:3 * hd * (h + 1)]              # [S, 3*hd]
        qh = blk[:, :hd]
        kh = blk[:, hd:2 * hd]
        vh = blk[:, 2 * hd:]
        energy = jnp.einsum('qd,kd->qk',
                            qh.astype(mm_dtype), kh.astype(mm_dtype),
                            preferred_element_type=jnp.float32) + bias
        m = jnp.max(energy, axis=-1, keepdims=True)
        p = jnp.exp(energy - m)
        denom = jnp.sum(p, axis=-1, keepdims=True)             # [S, 1]
        ctx_un = jnp.dot(p.astype(mm_dtype), vh.astype(mm_dtype),
                         preferred_element_type=jnp.float32)   # [S, hd]
        # normalize the narrow context, not the [S, S] probabilities
        ctx_ref[:, h * hd:(h + 1) * hd] = ctx_un / denom

    attn_out = jnp.dot(ctx_ref[...].astype(mm_dtype), wo_ref[...],
                       preferred_element_type=jnp.float32)
    attn_out = attn_out + vec_ref[ROW_BO, :H]

    # ---- residual + layer norm 1 (f32) ----
    y = x + attn_out
    mu = jnp.mean(y, axis=-1, keepdims=True)
    var = jnp.mean((y - mu) ** 2, axis=-1, keepdims=True)
    y = ((y - mu) * jax.lax.rsqrt(var + LN_EPS)
         * vec_ref[ROW_LN1_G, :H] + vec_ref[ROW_LN1_B, :H])

    # ---- position-wise feed-forward ----
    hid = jnp.dot(y.astype(mm_dtype), w1_ref[...],
                  preferred_element_type=jnp.float32) + vec_ref[ROW_B1, :PF_DIM]
    hid = jnp.maximum(hid, 0.0)                                # relu
    ffn = jnp.dot(hid.astype(mm_dtype), w2_ref[...],
                  preferred_element_type=jnp.float32) + vec_ref[ROW_B2, :H]

    # ---- residual + layer norm 2 (f32) ----
    z = y + ffn
    mu2 = jnp.mean(z, axis=-1, keepdims=True)
    var2 = jnp.mean((z - mu2) ** 2, axis=-1, keepdims=True)
    z = ((z - mu2) * jax.lax.rsqrt(var2 + LN_EPS)
         * vec_ref[ROW_LN2_G, :H] + vec_ref[ROW_LN2_B, :H])

    out_ref[...] = z.astype(out_ref.dtype)


def prepare_params(params, mm_dtype=jnp.float32):
    """One-time parameter packing (hoisted out of the per-call hot path).

    * W_q/W_k/W_v fused column-wise, HEAD-MAJOR ([q_h|k_h|v_h] per head), with
      the 1/sqrt(head_dim) attention scale folded into the Q columns & bias.
    * The 12 tiny bias / LayerNorm vectors packed into one [8, 128] f32 table.
    * Weight matrices cast to `mm_dtype` (bf16 for native-width MXU operands
      on v6e/v7x; f32 for the tight-numerics path).
    """
    scale = math.sqrt(HEAD_DIM)
    wq = params["wq"] / scale
    wk, wv = params["wk"], params["wv"]
    bq = params["bq"].reshape(-1) / scale
    bk = params["bk"].reshape(-1)
    bv = params["bv"].reshape(-1)

    w_cols, b_cols = [], []
    for h in range(N_HEADS):
        sl = slice(h * HEAD_DIM, (h + 1) * HEAD_DIM)
        w_cols += [wq[:, sl], wk[:, sl], wv[:, sl]]
        b_cols += [bq[sl], bk[sl], bv[sl]]
    wqkv = jnp.concatenate(w_cols, axis=1)      # [H, 3H], head-major
    bqkv = jnp.concatenate(b_cols)              # [3H]

    def pad_row(v, width=VEC_W):
        v = v.reshape(-1).astype(jnp.float32)
        return jnp.pad(v, (0, width - v.shape[0]))

    vecs = jnp.stack([
        pad_row(bqkv),
        pad_row(params["b1"]),
        pad_row(params["bo"]),
        pad_row(params["ln1_g"]),
        pad_row(params["ln1_b"]),
        pad_row(params["b2"]),
        pad_row(params["ln2_g"]),
        pad_row(params["ln2_b"]),
    ], axis=0)                                  # [8, 128] f32

    return {
        "wqkv": wqkv.astype(mm_dtype),
        "wo": params["wo"].astype(mm_dtype),
        "w1": params["w1"].astype(mm_dtype),
        "w2": params["w2"].astype(mm_dtype),
        "vecs": vecs,
    }


def encoder_layer(src, src_mask, prep):
    """src: [B, S, H] f32, src_mask: [B, 1, S] f32 (1 keep / 0 mask)."""
    B, S, H = src.shape
    assert H == HID_DIM
    assert src_mask.shape == (B, 1, S)

    def rep(shape):  # replicated (grid-invariant) full-array block
        return pl.BlockSpec(shape, lambda b: (0,) * len(shape))

    return pl.pallas_call(
        encoder_layer_kernel,
        out_shape=jax.ShapeDtypeStruct((B, S, H), src.dtype),
        grid_spec=pltpu.PrefetchScalarGridSpec(
            num_scalar_prefetch=0,
            grid=(B,),                                     # one step per batch
            in_specs=[
                pl.BlockSpec((None, S, H), lambda b: (b, 0, 0)),   # src
                pl.BlockSpec((None, 1, S), lambda b: (b, 0, 0)),   # mask
                rep((H, 3 * H)),       # fused Wq|Wk|Wv (head-major, scaled)
                rep((H, H)),           # Wo
                rep((H, PF_DIM)),      # W1
                rep((PF_DIM, H)),      # W2
                rep((8, VEC_W)),       # packed biases / LN params
            ],
            out_specs=pl.BlockSpec((None, S, H), lambda b: (b, 0, 0)),
            scratch_shapes=[pltpu.VMEM((S, HID_DIM), jnp.float32)],  # ctx
        ),
        compiler_params=pltpu.CompilerParams(
            dimension_semantics=("parallel",)),            # megacore on v7x
    )(src, src_mask, prep["wqkv"], prep["wo"], prep["w1"], prep["w2"],
      prep["vecs"])


def reference_encoder_layer(src, src_mask, p):
    """Pure-JAX reference of the PyTorch forward (dropout == identity)."""
    B, S, H = src.shape
    q = src @ p["wq"] + p["bq"][0]
    k = src @ p["wk"] + p["bk"][0]
    v = src @ p["wv"] + p["bv"][0]

    def split(t):  # [B, S, H] -> [B, nH, S, hd]
        return t.reshape(B, S, N_HEADS, HEAD_DIM).transpose(0, 2, 1, 3)

    Q, K, V = split(q), split(k), split(v)
    energy = jnp.einsum("bhqd,bhkd->bhqk", Q, K) / math.sqrt(HEAD_DIM)
    mask = src_mask[:, None, :, :]                       # [B,1,1,S]
    energy = jnp.where(mask == 0.0, -1e10, energy)
    attn = jax.nn.softmax(energy, axis=-1)
    ctx = jnp.einsum("bhqk,bhkd->bhqd", attn, V)
    ctx = ctx.transpose(0, 2, 1, 3).reshape(B, S, H)
    attn_out = ctx @ p["wo"] + p["bo"][0]

    def ln(x, g, b):
        mu = jnp.mean(x, axis=-1, keepdims=True)
        var = jnp.mean((x - mu) ** 2, axis=-1, keepdims=True)
        return (x - mu) * jax.lax.rsqrt(var + LN_EPS) * g[0] + b[0]

    y = ln(src + attn_out, p["ln1_g"], p["ln1_b"])
    ffn = jnp.maximum(y @ p["w1"] + p["b1"][0], 0.0) @ p["w2"] + p["b2"][0]
    return ln(y + ffn, p["ln2_g"], p["ln2_b"])


def make_params(key):
    ks = jax.random.split(key, 12)
    s = 0.1
    return {
        "wq": s * jax.random.normal(ks[0], (HID_DIM, HID_DIM), jnp.float32),
        "bq": s * jax.random.normal(ks[1], (1, HID_DIM), jnp.float32),
        "wk": s * jax.random.normal(ks[2], (HID_DIM, HID_DIM), jnp.float32),
        "bk": s * jax.random.normal(ks[3], (1, HID_DIM), jnp.float32),
        "wv": s * jax.random.normal(ks[4], (HID_DIM, HID_DIM), jnp.float32),
        "bv": s * jax.random.normal(ks[5], (1, HID_DIM), jnp.float32),
        "wo": s * jax.random.normal(ks[6], (HID_DIM, HID_DIM), jnp.float32),
        "bo": s * jax.random.normal(ks[7], (1, HID_DIM), jnp.float32),
        "ln1_g": jnp.ones((1, HID_DIM), jnp.float32),
        "ln1_b": jnp.zeros((1, HID_DIM), jnp.float32),
        "w1": s * jax.random.normal(ks[8], (HID_DIM, PF_DIM), jnp.float32),
        "b1": s * jax.random.normal(ks[9], (1, PF_DIM), jnp.float32),
        "w2": s * jax.random.normal(ks[10], (PF_DIM, HID_DIM), jnp.float32),
        "b2": s * jax.random.normal(ks[11], (1, HID_DIM), jnp.float32),
        "ln2_g": jnp.ones((1, HID_DIM), jnp.float32),
        "ln2_b": jnp.zeros((1, HID_DIM), jnp.float32),
    }


if __name__ == "__main__":
    B, S = 2, 8
    key = jax.random.PRNGKey(0)
    k_src, k_par = jax.random.split(key)

    src = jax.random.normal(k_src, (B, S, HID_DIM), jnp.float32)
    # mask: second batch element has its last 2 key positions masked out
    src_mask = jnp.ones((B, 1, S), jnp.float32)
    src_mask = src_mask.at[1, 0, -2:].set(0.0)

    params = make_params(k_par)
    with jax.default_matmul_precision("highest"):
        ref = reference_encoder_layer(src, src_mask, params)
    ref = jax.block_until_ready(ref)

    # --- f32 MXU-operand path: exact divide in softmax -> tight tolerance ---
    prep_f32 = prepare_params(params, mm_dtype=jnp.float32)
    out_f32 = jax.block_until_ready(encoder_layer(src, src_mask, prep_f32))
    assert out_f32.shape == (B, S, HID_DIM)
    err_f32 = float(jnp.max(jnp.abs(out_f32 - ref)))
    assert jnp.allclose(out_f32, ref, atol=1e-3, rtol=1e-3), err_f32

    # --- bf16 MXU-operand path (v6e/v7x rec.): deliberately wider tolerance ---
    prep_bf16 = prepare_params(params, mm_dtype=jnp.bfloat16)
    out_bf16 = jax.block_until_ready(encoder_layer(src, src_mask, prep_bf16))
    err_bf16 = float(jnp.max(jnp.abs(out_bf16 - ref)))
    assert jnp.allclose(out_bf16, ref, atol=5e-2, rtol=5e-2), err_bf16

    print("KERNEL_OK")
</pallas_src>

<mosaic_0001>
module attributes {stable_mosaic.version = 11 : i64} {
  func.func @encoder_layer_kernel(%arg0: i32, %arg1: memref<1x8x32xf32, #tpu.memory_space<vmem>>, %arg2: memref<1x1x8xf32, #tpu.memory_space<vmem>>, %arg3: memref<32x96xf32, #tpu.memory_space<vmem>>, %arg4: memref<32x32xf32, #tpu.memory_space<vmem>>, %arg5: memref<32x64xf32, #tpu.memory_space<vmem>>, %arg6: memref<64x32xf32, #tpu.memory_space<vmem>>, %arg7: memref<8x128xf32, #tpu.memory_space<vmem>>, %arg8: memref<1x8x32xf32, #tpu.memory_space<vmem>>, %arg9: memref<8x32xf32, #tpu.memory_space<vmem>>) attributes {dimension_semantics = [#tpu.dimension_semantics<parallel>], iteration_bounds = array<i64: 2>, scalar_prefetch = 0 : i64, scratch_operands = 1 : i64, tpu.core_type = #tpu.core_type<tc>, window_params = [{transform_indices = @transform_0, window_bounds = array<i64: 1, 8, 32>}, {transform_indices = @transform_1, window_bounds = array<i64: 1, 1, 8>}, {pipeline_mode = #tpu.pipeline_mode<synchronous>, transform_indices = @transform_2, window_bounds = array<i64: 32, 96>}, {pipeline_mode = #tpu.pipeline_mode<synchronous>, transform_indices = @transform_3, window_bounds = array<i64: 32, 32>}, {pipeline_mode = #tpu.pipeline_mode<synchronous>, transform_indices = @transform_4, window_bounds = array<i64: 32, 64>}, {pipeline_mode = #tpu.pipeline_mode<synchronous>, transform_indices = @transform_5, window_bounds = array<i64: 64, 32>}, {pipeline_mode = #tpu.pipeline_mode<synchronous>, transform_indices = @transform_6, window_bounds = array<i64: 8, 128>}, {transform_indices = @transform_7, window_bounds = array<i64: 1, 8, 32>}]} {
    %c0 = arith.constant 0 : index
    %c0_0 = arith.constant 0 : index
    %c0_1 = arith.constant 0 : index
    %0 = vector.load %arg1[%c0, %c0_0, %c0_1] : memref<1x8x32xf32, #tpu.memory_space<vmem>>, vector<1x8x32xf32>
    %1 = vector.shape_cast %0 : vector<1x8x32xf32> to vector<8x32xf32>
    %c0_2 = arith.constant 0 : index
    %c0_3 = arith.constant 0 : index
    %2 = vector.load %arg3[%c0_2, %c0_3] : memref<32x96xf32, #tpu.memory_space<vmem>>, vector<32x96xf32>
    %cst = arith.constant dense<0.000000e+00> : vector<8x96xf32>
    %3 = tpu.matmul %1, %2, %cst {dimension_numbers = #tpu.dot_dimension_numbers<[1], [0], [0], [1], [0, 0, 1, 1], [], []>} : vector<8x32xf32>, vector<32x96xf32>, vector<8x96xf32> -> vector<8x96xf32>
    %c0_4 = arith.constant 0 : index
    %c0_5 = arith.constant 0 : index
    %4 = vector.load %arg7[%c0_4, %c0_5] : memref<8x128xf32, #tpu.memory_space<vmem>>, vector<1x96xf32>
    %5 = vector.shape_cast %4 : vector<1x96xf32> to vector<96xf32>
    %6 = vector.shape_cast %5 : vector<96xf32> to vector<1x96xf32>
    %7 = vector.broadcast %6 : vector<1x96xf32> to vector<8x96xf32>
    %8 = arith.addf %3, %7 : vector<8x96xf32>
    %c0_6 = arith.constant 0 : index
    %c0_7 = arith.constant 0 : index
    %c0_8 = arith.constant 0 : index
    %9 = vector.load %arg2[%c0_6, %c0_7, %c0_8] : memref<1x1x8xf32, #tpu.memory_space<vmem>>, vector<1x1x8xf32>
    %10 = vector.shape_cast %9 : vector<1x1x8xf32> to vector<1x8xf32>
    %cst_9 = arith.constant 0.000000e+00 : f32
    %11 = vector.broadcast %cst_9 : f32 to vector<1x8xf32>
    %12 = arith.cmpf oeq, %10, %11 : vector<1x8xf32>
    %cst_10 = arith.constant -1.000000e+10 : f32
    %cst_11 = arith.constant 0.000000e+00 : f32
    %13 = vector.broadcast %cst_10 : f32 to vector<1x8xf32>
    %14 = vector.broadcast %cst_11 : f32 to vector<1x8xf32>
    %15 = arith.select %12, %13, %14 : vector<1x8xi1>, vector<1x8xf32>
    %16 = vector.extract_strided_slice %8 {offsets = [0, 0], sizes = [8, 24], strides = [1, 1]} : vector<8x96xf32> to vector<8x24xf32>
    %17 = vector.extract_strided_slice %16 {offsets = [0, 0], sizes = [8, 8], strides = [1, 1]} : vector<8x24xf32> to vector<8x8xf32>
    %18 = vector.extract_strided_slice %16 {offsets = [0, 8], sizes = [8, 8], strides = [1, 1]} : vector<8x24xf32> to vector<8x8xf32>
    %19 = vector.extract_strided_slice %16 {offsets = [0, 16], sizes = [8, 8], strides = [1, 1]} : vector<8x24xf32> to vector<8x8xf32>
    "tpu.trace_start"() <{level = 10 : i32, message = "qd,kd->qk"}> : () -> ()
    %cst_12 = arith.constant dense<0.000000e+00> : vector<8x8xf32>
    %20 = tpu.matmul %17, %18, %cst_12 {dimension_numbers = #tpu.dot_dimension_numbers<[1], [1], [0], [0], [0, 0, 1, 0], [], []>} : vector<8x8xf32>, vector<8x8xf32>, vector<8x8xf32> -> vector<8x8xf32>
    "tpu.trace_stop"() : () -> ()
    %21 = vector.broadcast %15 : vector<1x8xf32> to vector<8x8xf32>
    %22 = arith.addf %20, %21 : vector<8x8xf32>
    %cst_13 = arith.constant dense<0xFF800000> : vector<8xf32>
    %23 = vector.multi_reduction <maximumf>, %22, %cst_13 [1] : vector<8x8xf32> to vector<8xf32>
    %24 = vector.shape_cast %23 : vector<8xf32> to vector<8x1xf32>
    %25 = vector.broadcast %24 : vector<8x1xf32> to vector<8x8xf32>
    %26 = arith.subf %22, %25 : vector<8x8xf32>
    %27 = math.exp %26 : vector<8x8xf32>
    %cst_14 = arith.constant dense<0.000000e+00> : vector<8xf32>
    %28 = vector.multi_reduction <add>, %27, %cst_14 [1] : vector<8x8xf32> to vector<8xf32>
    %29 = vector.shape_cast %28 : vector<8xf32> to vector<8x1xf32>
    %cst_15 = arith.constant dense<0.000000e+00> : vector<8x8xf32>
    %30 = tpu.matmul %27, %19, %cst_15 {dimension_numbers = #tpu.dot_dimension_numbers<[1], [0], [0], [1], [0, 0, 1, 1], [], []>} : vector<8x8xf32>, vector<8x8xf32>, vector<8x8xf32> -> vector<8x8xf32>
    %31 = vector.broadcast %29 : vector<8x1xf32> to vector<8x8xf32>
    %32 = arith.divf %30, %31 : vector<8x8xf32>
    %c0_16 = arith.constant 0 : index
    %c0_17 = arith.constant 0 : index
    %33 = vector.load %arg9[%c0_16, %c0_17] : memref<8x32xf32, #tpu.memory_space<vmem>>, vector<8x8xf32>
    tpu.vector_store %arg9[%c0_16, %c0_17], %32 {strides = array<i32>} : memref<8x32xf32, #tpu.memory_space<vmem>>, vector<8x8xf32>,
    %34 = vector.extract_strided_slice %8 {offsets = [0, 24], sizes = [8, 24], strides = [1, 1]} : vector<8x96xf32> to vector<8x24xf32>
    %35 = vector.extract_strided_slice %34 {offsets = [0, 0], sizes = [8, 8], strides = [1, 1]} : vector<8x24xf32> to vector<8x8xf32>
    %36 = vector.extract_strided_slice %34 {offsets = [0, 8], sizes = [8, 8], strides = [1, 1]} : vector<8x24xf32> to vector<8x8xf32>
    %37 = vector.extract_strided_slice %34 {offsets = [0, 16], sizes = [8, 8], strides = [1, 1]} : vector<8x24xf32> to vector<8x8xf32>
    "tpu.trace_start"() <{level = 10 : i32, message = "qd,kd->qk"}> : () -> ()
    %cst_18 = arith.constant dense<0.000000e+00> : vector<8x8xf32>
    %38 = tpu.matmul %35, %36, %cst_18 {dimension_numbers = #tpu.dot_dimension_numbers<[1], [1], [0], [0], [0, 0, 1, 0], [], []>} : vector<8x8xf32>, vector<8x8xf32>, vector<8x8xf32> -> vector<8x8xf32>
    "tpu.trace_stop"() : () -> ()
    %39 = vector.broadcast %15 : vector<1x8xf32> to vector<8x8xf32>
    %40 = arith.addf %38, %39 : vector<8x8xf32>
    %cst_19 = arith.constant dense<0xFF800000> : vector<8xf32>
    %41 = vector.multi_reduction <maximumf>, %40, %cst_19 [1] : vector<8x8xf32> to vector<8xf32>
    %42 = vector.shape_cast %41 : vector<8xf32> to vector<8x1xf32>
    %43 = vector.broadcast %42 : vector<8x1xf32> to vector<8x8xf32>
    %44 = arith.subf %40, %43 : vector<8x8xf32>
    %45 = math.exp %44 : vector<8x8xf32>
    %cst_20 = arith.constant dense<0.000000e+00> : vector<8xf32>
    %46 = vector.multi_reduction <add>, %45, %cst_20 [1] : vector<8x8xf32> to vector<8xf32>
    %47 = vector.shape_cast %46 : vector<8xf32> to vector<8x1xf32>
    %cst_21 = arith.constant dense<0.000000e+00> : vector<8x8xf32>
    %48 = tpu.matmul %45, %37, %cst_21 {dimension_numbers = #tpu.dot_dimension_numbers<[1], [0], [0], [1], [0, 0, 1, 1], [], []>} : vector<8x8xf32>, vector<8x8xf32>, vector<8x8xf32> -> vector<8x8xf32>
    %49 = vector.broadcast %47 : vector<8x1xf32> to vector<8x8xf32>
    %50 = arith.divf %48, %49 : vector<8x8xf32>
    %c0_22 = arith.constant 0 : index
    %c8 = arith.constant 8 : index
    %51 = vector.load %arg9[%c0_22, %c8] : memref<8x32xf32, #tpu.memory_space<vmem>>, vector<8x8xf32>
    tpu.vector_store %arg9[%c0_22, %c8], %50 {strides = array<i32>} : memref<8x32xf32, #tpu.memory_space<vmem>>, vector<8x8xf32>,
    %52 = vector.extract_strided_slice %8 {offsets = [0, 48], sizes = [8, 24], strides = [1, 1]} : vector<8x96xf32> to vector<8x24xf32>
    %53 = vector.extract_strided_slice %52 {offsets = [0, 0], sizes = [8, 8], strides = [1, 1]} : vector<8x24xf32> to vector<8x8xf32>
    %54 = vector.extract_strided_slice %52 {offsets = [0, 8], sizes = [8, 8], strides = [1, 1]} : vector<8x24xf32> to vector<8x8xf32>
    %55 = vector.extract_strided_slice %52 {offsets = [0, 16], sizes = [8, 8], strides = [1, 1]} : vector<8x24xf32> to vector<8x8xf32>
    "tpu.trace_start"() <{level = 10 : i32, message = "qd,kd->qk"}> : () -> ()
    %cst_23 = arith.constant dense<0.000000e+00> : vector<8x8xf32>
    %56 = tpu.matmul %53, %54, %cst_23 {dimension_numbers = #tpu.dot_dimension_numbers<[1], [1], [0], [0], [0, 0, 1, 0], [], []>} : vector<8x8xf32>, vector<8x8xf32>, vector<8x8xf32> -> vector<8x8xf32>
    "tpu.trace_stop"() : () -> ()
    %57 = vector.broadcast %15 : vector<1x8xf32> to vector<8x8xf32>
    %58 = arith.addf %56, %57 : vector<8x8xf32>
    %cst_24 = arith.constant dense<0xFF800000> : vector<8xf32>
    %59 = vector.multi_reduction <maximumf>, %58, %cst_24 [1] : vector<8x8xf32> to vector<8xf32>
    %60 = vector.shape_cast %59 : vector<8xf32> to vector<8x1xf32>
    %61 = vector.broadcast %60 : vector<8x1xf32> to vector<8x8xf32>
    %62 = arith.subf %58, %61 : vector<8x8xf32>
    %63 = math.exp %62 : vector<8x8xf32>
    %cst_25 = arith.constant dense<0.000000e+00> : vector<8xf32>
    %64 = vector.multi_reduction <add>, %63, %cst_25 [1] : vector<8x8xf32> to vector<8xf32>
    %65 = vector.shape_cast %64 : vector<8xf32> to vector<8x1xf32>
    %cst_26 = arith.constant dense<0.000000e+00> : vector<8x8xf32>
    %66 = tpu.matmul %63, %55, %cst_26 {dimension_numbers = #tpu.dot_dimension_numbers<[1], [0], [0], [1], [0, 0, 1, 1], [], []>} : vector<8x8xf32>, vector<8x8xf32>, vector<8x8xf32> -> vector<8x8xf32>
    %67 = vector.broadcast %65 : vector<8x1xf32> to vector<8x8xf32>
    %68 = arith.divf %66, %67 : vector<8x8xf32>
    %c0_27 = arith.constant 0 : index
    %c16 = arith.constant 16 : index
    %69 = vector.load %arg9[%c0_27, %c16] : memref<8x32xf32, #tpu.memory_space<vmem>>, vector<8x8xf32>
    tpu.vector_store %arg9[%c0_27, %c16], %68 {strides = array<i32>} : memref<8x32xf32, #tpu.memory_space<vmem>>, vector<8x8xf32>,
    %70 = vector.extract_strided_slice %8 {offsets = [0, 72], sizes = [8, 24], strides = [1, 1]} : vector<8x96xf32> to vector<8x24xf32>
    %71 = vector.extract_strided_slice %70 {offsets = [0, 0], sizes = [8, 8], strides = [1, 1]} : vector<8x24xf32> to vector<8x8xf32>
    %72 = vector.extract_strided_slice %70 {offsets = [0, 8], sizes = [8, 8], strides = [1, 1]} : vector<8x24xf32> to vector<8x8xf32>
    %73 = vector.extract_strided_slice %70 {offsets = [0, 16], sizes = [8, 8], strides = [1, 1]} : vector<8x24xf32> to vector<8x8xf32>
    "tpu.trace_start"() <{level = 10 : i32, message = "qd,kd->qk"}> : () -> ()
    %cst_28 = arith.constant dense<0.000000e+00> : vector<8x8xf32>
    %74 = tpu.matmul %71, %72, %cst_28 {dimension_numbers = #tpu.dot_dimension_numbers<[1], [1], [0], [0], [0, 0, 1, 0], [], []>} : vector<8x8xf32>, vector<8x8xf32>, vector<8x8xf32> -> vector<8x8xf32>
    "tpu.trace_stop"() : () -> ()
    %75 = vector.broadcast %15 : vector<1x8xf32> to vector<8x8xf32>
    %76 = arith.addf %74, %75 : vector<8x8xf32>
    %cst_29 = arith.constant dense<0xFF800000> : vector<8xf32>
    %77 = vector.multi_reduction <maximumf>, %76, %cst_29 [1] : vector<8x8xf32> to vector<8xf32>
    %78 = vector.shape_cast %77 : vector<8xf32> to vector<8x1xf32>
    %79 = vector.broadcast %78 : vector<8x1xf32> to vector<8x8xf32>
    %80 = arith.subf %76, %79 : vector<8x8xf32>
    %81 = math.exp %80 : vector<8x8xf32>
    %cst_30 = arith.constant dense<0.000000e+00> : vector<8xf32>
    %82 = vector.multi_reduction <add>, %81, %cst_30 [1] : vector<8x8xf32> to vector<8xf32>
    %83 = vector.shape_cast %82 : vector<8xf32> to vector<8x1xf32>
    %cst_31 = arith.constant dense<0.000000e+00> : vector<8x8xf32>
    %84 = tpu.matmul %81, %73, %cst_31 {dimension_numbers = #tpu.dot_dimension_numbers<[1], [0], [0], [1], [0, 0, 1, 1], [], []>} : vector<8x8xf32>, vector<8x8xf32>, vector<8x8xf32> -> vector<8x8xf32>
    %85 = vector.broadcast %83 : vector<8x1xf32> to vector<8x8xf32>
    %86 = arith.divf %84, %85 : vector<8x8xf32>
    %c0_32 = arith.constant 0 : index
    %c24 = arith.constant 24 : index
    %87 = vector.load %arg9[%c0_32, %c24] : memref<8x32xf32, #tpu.memory_space<vmem>>, vector<8x8xf32>
    tpu.vector_store %arg9[%c0_32, %c24], %86 {strides = array<i32>} : memref<8x32xf32, #tpu.memory_space<vmem>>, vector<8x8xf32>,
    %c0_33 = arith.constant 0 : index
    %c0_34 = arith.constant 0 : index
    %88 = vector.load %arg9[%c0_33, %c0_34] : memref<8x32xf32, #tpu.memory_space<vmem>>, vector<8x32xf32>
    %c0_35 = arith.constant 0 : index
    %c0_36 = arith.constant 0 : index
    %89 = vector.load %arg4[%c0_35, %c0_36] : memref<32x32xf32, #tpu.memory_space<vmem>>, vector<32x32xf32>
    %cst_37 = arith.constant dense<0.000000e+00> : vector<8x32xf32>
    %90 = tpu.matmul %88, %89, %cst_37 {dimension_numbers = #tpu.dot_dimension_numbers<[1], [0], [0], [1], [0, 0, 1, 1], [], []>} : vector<8x32xf32>, vector<32x32xf32>, vector<8x32xf32> -> vector<8x32xf32>
    %c2 = arith.constant 2 : index
    %c0_38 = arith.constant 0 : index
    %91 = vector.load %arg7[%c2, %c0_38] : memref<8x128xf32, #tpu.memory_space<vmem>>, vector<1x32xf32>
    %92 = vector.shape_cast %91 : vector<1x32xf32> to vector<32xf32>
    %93 = vector.shape_cast %92 : vector<32xf32> to vector<1x32xf32>
    %94 = vector.broadcast %93 : vector<1x32xf32> to vector<8x32xf32>
    %95 = arith.addf %90, %94 : vector<8x32xf32>
    %96 = arith.addf %1, %95 : vector<8x32xf32>
    %cst_39 = arith.constant dense<0.000000e+00> : vector<8xf32>
    %97 = vector.multi_reduction <add>, %96, %cst_39 [1] : vector<8x32xf32> to vector<8xf32>
    %98 = vector.shape_cast %97 : vector<8xf32> to vector<8x1xf32>
    %cst_40 = arith.constant 3.200000e+01 : f32
    %99 = vector.broadcast %cst_40 : f32 to vector<8x1xf32>
    %100 = arith.divf %98, %99 : vector<8x1xf32>
    %101 = vector.broadcast %100 : vector<8x1xf32> to vector<8x32xf32>
    %102 = arith.subf %96, %101 : vector<8x32xf32>
    %103 = arith.mulf %102, %102 : vector<8x32xf32>
    %cst_41 = arith.constant dense<0.000000e+00> : vector<8xf32>
    %104 = vector.multi_reduction <add>, %103, %cst_41 [1] : vector<8x32xf32> to vector<8xf32>
    %105 = vector.shape_cast %104 : vector<8xf32> to vector<8x1xf32>
    %cst_42 = arith.constant 3.200000e+01 : f32
    %106 = vector.broadcast %cst_42 : f32 to vector<8x1xf32>
    %107 = arith.divf %105, %106 : vector<8x1xf32>
    %108 = vector.broadcast %100 : vector<8x1xf32> to vector<8x32xf32>
    %109 = arith.subf %96, %108 : vector<8x32xf32>
    %cst_43 = arith.constant 9.99999974E-6 : f32
    %110 = vector.broadcast %cst_43 : f32 to vector<8x1xf32>
    %111 = arith.addf %107, %110 : vector<8x1xf32>
    %112 = math.rsqrt %111 : vector<8x1xf32>
    %113 = vector.broadcast %112 : vector<8x1xf32> to vector<8x32xf32>
    %114 = arith.mulf %109, %113 : vector<8x32xf32>
    %c3 = arith.constant 3 : index
    %c0_44 = arith.constant 0 : index
    %115 = vector.load %arg7[%c3, %c0_44] : memref<8x128xf32, #tpu.memory_space<vmem>>, vector<1x32xf32>
    %116 = vector.shape_cast %115 : vector<1x32xf32> to vector<32xf32>
    %117 = vector.shape_cast %116 : vector<32xf32> to vector<1x32xf32>
    %118 = vector.broadcast %117 : vector<1x32xf32> to vector<8x32xf32>
    %119 = arith.mulf %114, %118 : vector<8x32xf32>
    %c4 = arith.constant 4 : index
    %c0_45 = arith.constant 0 : index
    %120 = vector.load %arg7[%c4, %c0_45] : memref<8x128xf32, #tpu.memory_space<vmem>>, vector<1x32xf32>
    %121 = vector.shape_cast %120 : vector<1x32xf32> to vector<32xf32>
    %122 = vector.shape_cast %121 : vector<32xf32> to vector<1x32xf32>
    %123 = vector.broadcast %122 : vector<1x32xf32> to vector<8x32xf32>
    %124 = arith.addf %119, %123 : vector<8x32xf32>
    %c0_46 = arith.constant 0 : index
    %c0_47 = arith.constant 0 : index
    %125 = vector.load %arg5[%c0_46, %c0_47] : memref<32x64xf32, #tpu.memory_space<vmem>>, vector<32x64xf32>
    %cst_48 = arith.constant dense<0.000000e+00> : vector<8x64xf32>
    %126 = tpu.matmul %124, %125, %cst_48 {dimension_numbers = #tpu.dot_dimension_numbers<[1], [0], [0], [1], [0, 0, 1, 1], [], []>} : vector<8x32xf32>, vector<32x64xf32>, vector<8x64xf32> -> vector<8x64xf32>
    %c1 = arith.constant 1 : index
    %c0_49 = arith.constant 0 : index
    %127 = vector.load %arg7[%c1, %c0_49] : memref<8x128xf32, #tpu.memory_space<vmem>>, vector<1x64xf32>
    %128 = vector.shape_cast %127 : vector<1x64xf32> to vector<64xf32>
    %129 = vector.shape_cast %128 : vector<64xf32> to vector<1x64xf32>
    %130 = vector.broadcast %129 : vector<1x64xf32> to vector<8x64xf32>
    %131 = arith.addf %126, %130 : vector<8x64xf32>
    %cst_50 = arith.constant 0.000000e+00 : f32
    %132 = vector.broadcast %cst_50 : f32 to vector<8x64xf32>
    %133 = arith.maximumf %131, %132 : vector<8x64xf32>
    %c0_51 = arith.constant 0 : index
    %c0_52 = arith.constant 0 : index
    %134 = vector.load %arg6[%c0_51, %c0_52] : memref<64x32xf32, #tpu.memory_space<vmem>>, vector<64x32xf32>
    %cst_53 = arith.constant dense<0.000000e+00> : vector<8x32xf32>
    %135 = tpu.matmul %133, %134, %cst_53 {dimension_numbers = #tpu.dot_dimension_numbers<[1], [0], [0], [1], [0, 0, 1, 1], [], []>} : vector<8x64xf32>, vector<64x32xf32>, vector<8x32xf32> -> vector<8x32xf32>
    %c5 = arith.constant 5 : index
    %c0_54 = arith.constant 0 : index
    %136 = vector.load %arg7[%c5, %c0_54] : memref<8x128xf32, #tpu.memory_space<vmem>>, vector<1x32xf32>
    %137 = vector.shape_cast %136 : vector<1x32xf32> to vector<32xf32>
    %138 = vector.shape_cast %137 : vector<32xf32> to vector<1x32xf32>
    %139 = vector.broadcast %138 : vector<1x32xf32> to vector<8x32xf32>
    %140 = arith.addf %135, %139 : vector<8x32xf32>
    %141 = arith.addf %124, %140 : vector<8x32xf32>
    %cst_55 = arith.constant dense<0.000000e+00> : vector<8xf32>
    %142 = vector.multi_reduction <add>, %141, %cst_55 [1] : vector<8x32xf32> to vector<8xf32>
    %143 = vector.shape_cast %142 : vector<8xf32> to vector<8x1xf32>
    %cst_56 = arith.constant 3.200000e+01 : f32
    %144 = vector.broadcast %cst_56 : f32 to vector<8x1xf32>
    %145 = arith.divf %143, %144 : vector<8x1xf32>
    %146 = vector.broadcast %145 : vector<8x1xf32> to vector<8x32xf32>
    %147 = arith.subf %141, %146 : vector<8x32xf32>
    %148 = arith.mulf %147, %147 : vector<8x32xf32>
    %cst_57 = arith.constant dense<0.000000e+00> : vector<8xf32>
    %149 = vector.multi_reduction <add>, %148, %cst_57 [1] : vector<8x32xf32> to vector<8xf32>
    %150 = vector.shape_cast %149 : vector<8xf32> to vector<8x1xf32>
    %cst_58 = arith.constant 3.200000e+01 : f32
    %151 = vector.broadcast %cst_58 : f32 to vector<8x1xf32>
    %152 = arith.divf %150, %151 : vector<8x1xf32>
    %153 = vector.broadcast %145 : vector<8x1xf32> to vector<8x32xf32>
    %154 = arith.subf %141, %153 : vector<8x32xf32>
    %cst_59 = arith.constant 9.99999974E-6 : f32
    %155 = vector.broadcast %cst_59 : f32 to vector<8x1xf32>
    %156 = arith.addf %152, %155 : vector<8x1xf32>
    %157 = math.rsqrt %156 : vector<8x1xf32>
    %158 = vector.broadcast %157 : vector<8x1xf32> to vector<8x32xf32>
    %159 = arith.mulf %154, %158 : vector<8x32xf32>
    %c6 = arith.constant 6 : index
    %c0_60 = arith.constant 0 : index
    %160 = vector.load %arg7[%c6, %c0_60] : memref<8x128xf32, #tpu.memory_space<vmem>>, vector<1x32xf32>
    %161 = vector.shape_cast %160 : vector<1x32xf32> to vector<32xf32>
    %162 = vector.shape_cast %161 : vector<32xf32> to vector<1x32xf32>
    %163 = vector.broadcast %162 : vector<1x32xf32> to vector<8x32xf32>
    %164 = arith.mulf %159, %163 : vector<8x32xf32>
    %c7 = arith.constant 7 : index
    %c0_61 = arith.constant 0 : index
    %165 = vector.load %arg7[%c7, %c0_61] : memref<8x128xf32, #tpu.memory_space<vmem>>, vector<1x32xf32>
    %166 = vector.shape_cast %165 : vector<1x32xf32> to vector<32xf32>
    %167 = vector.shape_cast %166 : vector<32xf32> to vector<1x32xf32>
    %168 = vector.broadcast %167 : vector<1x32xf32> to vector<8x32xf32>
    %169 = arith.addf %164, %168 : vector<8x32xf32>
    %c0_62 = arith.constant 0 : index
    %c0_63 = arith.constant 0 : index
    %c0_64 = arith.constant 0 : index
    %170 = vector.load %arg8[%c0_62, %c0_63, %c0_64] : memref<1x8x32xf32, #tpu.memory_space<vmem>>, vector<1x8x32xf32>
    %171 = vector.shape_cast %170 : vector<1x8x32xf32> to vector<8x32xf32>
    %172 = vector.shape_cast %169 : vector<8x32xf32> to vector<1x8x32xf32>
    tpu.vector_store %arg8[%c0_62, %c0_63, %c0_64], %172 {strides = array<i32>} : memref<1x8x32xf32, #tpu.memory_space<vmem>>, vector<1x8x32xf32>,
    return
  }
  func.func @transform_0(%arg0: i32) -> (i32, i32, i32) {
    %c0_i32 = arith.constant 0 : i32
    %c0_i32_0 = arith.constant 0 : i32
    %c0_i32_1 = arith.constant 0 : i32
    return %arg0, %c0_i32, %c0_i32_0 : i32, i32, i32
  }
  func.func @transform_1(%arg0: i32) -> (i32, i32, i32) {
    %c0_i32 = arith.constant 0 : i32
    %c0_i32_0 = arith.constant 0 : i32
    %c0_i32_1 = arith.constant 0 : i32
    return %arg0, %c0_i32, %c0_i32_0 : i32, i32, i32
  }
  func.func @transform_2(%arg0: i32) -> (i32, i32) {
    %c0_i32 = arith.constant 0 : i32
    %c0_i32_0 = arith.constant 0 : i32
    %c0_i32_1 = arith.constant 0 : i32
    return %c0_i32, %c0_i32_0 : i32, i32
  }
  func.func @transform_3(%arg0: i32) -> (i32, i32) {
    %c0_i32 = arith.constant 0 : i32
    %c0_i32_0 = arith.constant 0 : i32
    %c0_i32_1 = arith.constant 0 : i32
    return %c0_i32, %c0_i32_0 : i32, i32
  }
  func.func @transform_4(%arg0: i32) -> (i32, i32) {
    %c0_i32 = arith.constant 0 : i32
    %c0_i32_0 = arith.constant 0 : i32
    %c0_i32_1 = arith.constant 0 : i32
    return %c0_i32, %c0_i32_0 : i32, i32
  }
  func.func @transform_5(%arg0: i32) -> (i32, i32) {
    %c0_i32 = arith.constant 0 : i32
    %c0_i32_0 = arith.constant 0 : i32
    %c0_i32_1 = arith.constant 0 : i32
    return %c0_i32, %c0_i32_0 : i32, i32
  }
  func.func @transform_6(%arg0: i32) -> (i32, i32) {
    %c0_i32 = arith.constant 0 : i32
    %c0_i32_0 = arith.constant 0 : i32
    %c0_i32_1 = arith.constant 0 : i32
    return %c0_i32, %c0_i32_0 : i32, i32
  }
  func.func @transform_7(%arg0: i32) -> (i32, i32, i32) {
    %c0_i32 = arith.constant 0 : i32
    %c0_i32_0 = arith.constant 0 : i32
    %c0_i32_1 = arith.constant 0 : i32
    return %arg0, %c0_i32, %c0_i32_0 : i32, i32, i32
  }
}

</mosaic_0001>

<bundles_post_ra>
// kernel: tpu_custom_call.1
= control target key start
LH: loop header
LB: loop body
LE: loop exit
PB: predicated region body
PF: predicated region fallthrough
CT: control target
= control target key end

     0   :  { %12 = vsyncpa [#allocation4], 0  ;;  %s2262_s0 = inlined_call_operand.hbm [shape: f32[2,8,32], index: 0, kind: input, shape index: {}]   ;;  %s2263_s1 = inlined_call_operand.vmem [shape: f32[2,1,8], index: 1, kind: input, shape index: {}]   ;;  %s2264_s2 = inlined_call_operand.vmem [shape: f32[32,96], index: 2, kind: input, shape index: {}]   ;;  %s2265_s3 = inlined_call_operand.vmem [shape: f32[32,32], index: 3, kind: input, shape index: {}]   ;;  %s2266_s4 = inlined_call_operand.vmem [shape: f32[32,64], index: 4, kind: input, shape index: {}]   ;;  %s2267_s5 = inlined_call_operand.vmem [shape: f32[64,32], index: 5, kind: input, shape index: {}]   ;;  %s2268_s6 = inlined_call_operand.vmem [shape: f32[8,128], index: 6, kind: input, shape index: {}]   ;;  %s2269_s7 = inlined_call_operand.hbm [shape: f32[2,8,32], index: 7, kind: output, shape index: {}]  }
   0x1   :  { %14 = vsyncpa [#allocation4 + $0x1], 0 }
   0x2   :  { %15 = vsyncpa [#allocation5], 0 }
   0x3   :  { %17 = vsyncpa [#allocation5 + $0x1], 0  ;;  %s1918_s24 = smov 0   ;;  %s1920_s25 = smov 0  }
   0x4   :  { %s1922_s26 = smov 0   ;;  %s1924_s27 = smov 0  }
   0x5 LB: > { %s1939_s28 = sadd.s32 4294967295, %s1857_s27   ;;  %s1480_s29 = sadd.s32 4294967294, %s1857_s27   ;;  %s1857_s27 = sphi %s1924_s27, %s2284_s27   ;;  %s1853_s26 = sphi %s1922_s26, %s2283_s26   ;;  %s1849_s25 = sphi %s1920_s25, %s2282_s25   ;;  %s1845_s24 = sphi %s1918_s24, %s2281_s24  }
   0x6   : > { %s1943_s30 = sadd.s32 1, %s1857_s27   ;;  %s30_s8 = sadd.s32 1, %s1853_s26 }
   0x7   : > { %s27_s9 = ssub.s32 %s1857_s27, %s1943_s30  ;;  %p37_p0 = scmp.ne.s32.totalorder %s1853_s26, %s1849_s25 }
   0x8   : > { %p28_p1 = scmp.eq.s32.totalorder %s27_s9, 0  ;;  %p38_p2 = scmp.eq.s32.totalorder %s1857_s27, 0 }
   0x9   : > { %p43_p3 = scmp.ne.s32.totalorder %s1849_s25, %s1845_s24  ;;  %p44_p4 = scmp.eq.s32.totalorder %s1939_s28, 0 }
   0xa   : > { %s1955_s10 = scalar_select %p28_p1, %s1853_s26, %s30_s8  }
   0xb   : > { %p1957_p5 = por %p38_p2, %p37_p0  ;;  %p1961_p6 = por %p44_p4, %p43_p3 }
   0xc   : > { %p198_p7 = scmp.eq.s32.totalorder %s1939_s28, 1  ;;  %p204_p8 = scmp.eq.s32.totalorder %s1480_s29, 1 }
   0xd   : > { %p1690_p10 = scmp.lt.s32.totalorder %s1857_s27, 2  ;;  %s239_s15 = sand.u32 1, %s1853_s26  }
   0xe   : > { %p1968_p11 = por %p198_p7, %p37_p0  ;;  %p1972_p12 = por %p204_p8, %p43_p3 }
   0xf   : > { %s1484_s16 = sshll.u32 %s1857_s27, 7  ;;  %s1483_s17 = sshll.u32 %s239_s15, 3 }
  0x10   : > { %s2273_s13 = scalar_select %p1968_p11, 1, 0 }
  0x11   : > { %s2274_s14 = scalar_select %p1972_p12, 1, 0 }
  0x12   : > { %s1981_s20 = scalar_lea.hbm %s2262_s0, %s1484_s16  ;;  %s243_s21 = scalar_lea.vmem [#allocation3], %s1483_s17 }
  0x13   : > { %s250_s22 = sshll.u32 %s243_s21, 4  ;;  %p1985_p13 = pnand %p1690_p10, %p1957_p5  ;;  %s1989_s22 = int_to_ptr.vmem [resolvable:$true] %s250_s22 }
  0x14   : > { %s240_s29 = scalar_lea.sflag [#allocation4], %s239_s15  ;;  %s1761_s8 = scalar_lea.hbm %s1981_s20, 128 }
  0x15   : > { %p1762_p2 = scmp.ne.s32.totalorder %s1981_s20, %s1761_s8  ;;  %p1763_p3 = pneg %p1985_p13 }
  0x16   : > { %s1766_s16 = scalar_lea.hbm %s2262_s0, 256  ;;  %p1767_p5 = scmp.lt.u32.totalorder %s1981_s20, %s2262_s0 }
  0x17   : > { %p1764_p4 = pnand %p1763_p3, %p1762_p2  ;;  %p1768_p8 = scmp.lt.u32.totalorder %s1766_s16, %s1761_s8 }
  0x18   : > { %p1770_p9 = scmp.lt.u32.totalorder %s1761_s8, %s1981_s20 }
  0x19   : > { %p1765_p7 = pneg %p1764_p4  ;;  %p1769_p10 = por %p1768_p8, %p1767_p5 }
  0x1b   : > { %p1771_p0 = por %p1770_p9, %p1769_p10 }
  0x1d   : > { %p1772_p1 = pnand %p1771_p0, %p1765_p7 }
  0x1f   : > { %1775 = shalt.err (!%p1772_p1)
}
  0x20   : > { %s1776_s15 = scalar_lea.vmem %s1989_s22, 128  ;;  %s1859_s19 = smov [#allocation3]  }
  0x21   : > { %p1777_p2 = scmp.ne.s32.totalorder %s1989_s22, %s1776_s15  ;;  %s1781_s21 = sshll.u32 %s1859_s19, 4  ;;  %s1782_s21 = int_to_ptr.vmem [resolvable:$false] %s1781_s21 }
  0x22   : > { %s1783_s9 = scalar_lea.vmem %s1782_s21, 256  ;;  %p1784_p11 = scmp.lt.s32.totalorder %s1989_s22, %s1782_s21 }
  0x23   : > { %p1779_p4 = pnand %p1777_p2, %p1763_p3  ;;  %p1785_p5 = scmp.lt.s32.totalorder %s1783_s9, %s1776_s15 }
  0x25   : > { %p1780_p12 = pneg %p1779_p4  ;;  %p1786_p8 = por %p1785_p5, %p1784_p11 }
  0x27   : > { %p1787_p9 = pnand %p1786_p8, %p1780_p12 }
  0x29   : > { %1790 = shalt.err (!%p1787_p9)
}
  0x2a   : > { %1685 = dma.hbm_to_vmem [thread:$0]  (!%p1985_p13), %s1981_s20, 128, %s1989_s22, %s240_s29  }
  0x2b   : > { %p2276_p0 = scmp.lt.s32.totalorder %s1857_s27, 3  ;;  %p2277_p1 = scmp.ge.s32.totalorder %s1857_s27, 1 }
  0x2d   : > { %p262_p3 = pnand %p2277_p1, %p2276_p0 }
  0x2e   : > { %s2023_s8 = sand.u32 (!%p262_p3), 1, %s1849_s25  }
  0x2f   : > { %265 = sbr.rel (%p262_p3) target bundleno = 2447 (0x98f), region = 48  ;;  %s1486_s11 = sshll.u32 (!%p262_p3), %s2023_s8, 3 }
  0x30   : > { %s268_s16 = scalar_lea.sflag (!%p262_p3), [#allocation4], %s2023_s8  ;;  %s271_s23 = scalar_lea.vmem (!%p262_p3), [#allocation3], %s1486_s11 }
  0x36   : > { %1836 = dma.done.wait (%p1961_p6), %s268_s16, 128  }
  0x37   : > { %1838 = vsyncadd (%p1961_p6), %s268_s16, 4294967168  ;;  %v1860_v0 = vmov 0.0|0.0   ;;  %vm1861_vm0 = vmmov 0   ;;  %v1862_v1 = vmov 0.0   ;;  %v309_v2 = vld [vmem:[%s2264_s2] sm:$0xff]  ;;  %v310_v3 = vld [vmem:[%s2264_s2 + $0x8] sm:$0xff]  ;;  %v396_v20 = vlaneseq }
  0x38   : > { %1648 = vmatprep.subr.bf16.mxu1 %v1860_v0  ;;  %1564 = vmatprep.mubr.msk.f32.mxu1 %vm1861_vm0, %v1862_v1  ;;  %v311_v4 = vld [vmem:[%s2264_s2 + $0x10] sm:$0xff]  ;;  %v1649_v5 = vpack.c.bf16 %v310_v3, %v309_v2  ;;  %v312_v6 = vld [vmem:[%s2264_s2 + $0x18] sm:$0xff]  ;;  %vm318_vm1 = vcmask 261120   ;;  %v1488_v9 = vld [vmem:[%s2268_s6] ss:$0 sm:$0xff]  ;;  %s1863_s16 = smov 104  }
  0x39   : > { %1577 = vmatprep.subr.mxu0 %v1862_v1  ;;  %1579 = vmatprep.mubr.msk.f32.mxu0 %vm1861_vm0, %v1862_v1  ;;  %v1652_v7 = vpack.c.bf16 %v312_v6, %v311_v4  ;;  %v2052_v8 = vld [vmem:[%s271_s23] sm:$0xff]  ;;  %s1864_s23 = smov 120   ;;  %s1865_s20 = smov 72   ;;  %vm404_vm2 = vcmask 64512   ;;  %v397_v22 = vshrl.u32 %v396_v20, 7  ;;  %vm736_vm4 = vcmask 130112  }
  0x3a   : > { %1650 = vmatpush3.bf16.msra.mxu1 %v1649_v5  ;;  %s1866_s22 = smov 96   ;;  %s1867_s29 = smov 48   ;;  %vm907_vm5 = vcmask 195712   ;;  %vm1078_vm6 = vcmask 261312   ;;  %vm1286_vm7 = vcmask 523264  }
  0x3b   : > { %1651 = vmatprep.subr.bf16.mxu1 %v1860_v0  ;;  %s1868_s12 = smov 80   ;;  %s1869_s17 = smov 56   ;;  %v398_v23 = vsub.s32 0, %v397_v22  ;;  %v1083_v22 = vld [vmem:[%s2265_s3 + $0x10] sm:$0xff] }
  0x3c   : > { %p305_p6 = scmp.lt.s32.totalorder %s1939_s28, 1  ;;  %s1870_s9 = smov 88  }
  0x3d   : > { %p2278_p12 = scmp.ne.s32.totalorder %s2273_s13, 0 }
  0x3e   : > { %1653 = vmatpush3.bf16.msra.mxu1 %v1652_v7  ;;  %s306_s18 = scalar_select %p305_p6, %s1939_s28, 1 }
  0x3f   : > { %1567 = vmatprep.subr.mxu1 %v1862_v1 }
  0x40   : > { %s307_s21 = scalar_lea.vmem %s2263_s1, %s306_s18 }
  0x41   : > { %1565 = vmatmul.mubr.msk.f32.vlgmr.msra.gmra.mrb[0].mxu1 %vm318_vm1, %v2052_v8  ;;  %v392_v21 = vld [vmem:[%s307_s21] sm:$0x1]  ;;  %s1388_s21 = scalar_lea.sflag [#allocation5], %s2023_s8 }
  0x42   : > { %1569 = vmatprep.mubr.msk.f32.mxu1 %vm1861_vm0, %v1862_v1  ;;  %vm393_vm3 = vcmp.eq.f32.partialorder %v392_v21, 0.0 }
  0x43   : > { %v394_v24 = vsel %vm393_vm3, -1e+10, %v1862_v1 }
  0x44   : > { %v399_v25 = vrot.slane %v394_v24, %v398_v23  ;;  %v1084_v23 = vld [vmem:[%s2265_s3 + $0x18] sm:$0xff] }
 0x114   : > { %v388_v10 = vpop.f32.mrb[0].mxu1 }
 0x115   : > { %v2062_v11 = vadd.f32 %v1488_v9, %v388_v10  ;;  %v1566_v12 = vpop.f32.mrb[1].mxu1 }
 0x117   : > { %567 = vrot.lane.b32.xlu1 %v2062_v11, %s1863_s16  ;;  %402 = vrot.lane.b32.xlu0 %v2062_v11, %s1864_s23  ;;  %s1871_s16 = smov 112   ;;  %s1872_s23 = smov 40  }
 0x11b   : > { %740 = vrot.lane.b32.xlu1 %v2062_v11, %s1865_s20  ;;  %569 = vrot.lane.b32.xlu0 %v2062_v11, %s1866_s22  ;;  %s1873_s20 = smov 64   ;;  %s1874_s22 = smov 8  }
 0x11f   : > { %911 = vrot.lane.b32.xlu1 %v2062_v11, %s1867_s29  ;;  %738 = vrot.lane.b32.xlu0 %v2062_v11, %s1868_s12  ;;  %s1513_s29 = sshll.u32 %s1939_s28, 7  ;;  %s304_s12 = scalar_lea.vmem [#allocation6], %s1486_s11 }
 0x120   : > { %s2217_s19 = scalar_lea.hbm %s2269_s7, %s1513_s29  ;;  %s1877_s28 = smov [#allocation6]  }
 0x121   : > { %s1795_s11 = sshll.u32 %s1877_s28, 4  ;;  %s1796_s11 = int_to_ptr.vmem [resolvable:$false] %s1795_s11 }
 0x123   : > { %909 = vrot.lane.b32.xlu0 %v2062_v11, %s1869_s17  ;;  %s1401_s17 = sshll.u32 %s304_s12, 4  ;;  %s2219_s17 = int_to_ptr.vmem [resolvable:$true] %s1401_s17 }
 0x124   : > { %p1798_p10 = scmp.lt.s32.totalorder %s2219_s17, %s1796_s11 }
 0x189   : > { %v568_v13 = vpop.permute.xlu1 %567  ;;  %v403_v14 = vpop.permute.xlu0 %402 }
 0x18a   : > { %1568 = vmatpush3.xpose.msk.msra.mxu1 %vm404_vm2, %v403_v14 }
 0x18b   : > { %1572 = vmatprep.subr.mxu1 %v1862_v1 }
 0x18d   : > { %1570 = vmatmul.mubr.msk.f32.vlgmr.msra.gmra.mrb[2].mxu1 %vm404_vm2, %v2062_v11  ;;  %v570_v15 = vpop.permute.xlu0 %569  ;;  %v741_v16 = vpop.permute.xlu1 %740 }
 0x18e   : > { %1578 = vmatpush3.xpose.msk.msra.mxu0 %vm404_vm2, %v570_v15  ;;  %1574 = vmatprep.mubr.msk.f32.mxu1 %vm1861_vm0, %v1862_v1 }
 0x18f   : > { %1587 = vmatprep.subr.mxu0 %v1862_v1 }
 0x191   : > { %1580 = vmatmul.mubr.msk.f32.vlgmr.msra.gmra.mrb[0].mxu0 %vm404_vm2, %v568_v13  ;;  %v739_v17 = vpop.permute.xlu0 %738  ;;  %v912_v18 = vpop.permute.xlu1 %911 }
 0x192   : > { %1588 = vmatpush3.xpose.msk.msra.mxu0 %vm404_vm2, %v741_v16  ;;  %1589 = vmatprep.mubr.msk.f32.mxu0 %vm1861_vm0, %v1862_v1 }
 0x193   : > { %1597 = vmatprep.subr.mxu0 %v1862_v1 }
 0x195   : > { %1590 = vmatmul.mubr.msk.f32.vlgmr.msra.gmra.mrb[2].mxu0 %vm404_vm2, %v739_v17  ;;  %v910_v19 = vpop.permute.xlu0 %909  ;;  %v1081_v17 = vld [vmem:[%s2265_s3] sm:$0xff] }
 0x196   : > { %1598 = vmatpush3.xpose.msk.msra.mxu0 %vm404_vm2, %v912_v18  ;;  %1599 = vmatprep.mubr.msk.f32.mxu0 %vm1861_vm0, %v1862_v1  ;;  %v1082_v18 = vld [vmem:[%s2265_s3 + $0x8] sm:$0xff] }
 0x197   : > { %1654 = vmatprep.subr.bf16.mxu0 %v1860_v0  ;;  %v1655_v21 = vpack.c.bf16 %v1082_v18, %v1081_v17 }
 0x199   : > { %1600 = vmatmul.mubr.msk.f32.vlgmr.msra.gmra.mrb[4].mxu0 %vm404_vm2, %v910_v19 }
 0x19a   : > { %1615 = vmatprep.mubr.msk.f32.mxu0 %vm1861_vm0, %v1862_v1  ;;  %1656 = vmatpush3.bf16.msra.mxu0 %v1655_v21 }
 0x19b   : > { %1657 = vmatprep.subr.bf16.mxu0 %v1860_v0 }
 0x260   : > { %v475_v26 = vpop.f32.mrb[2].mxu1 }
 0x261   : > { %v476_v27 = vadd.f32 %v475_v26, %v399_v25  ;;  %v1571_v28 = vpop.f32.mrb[3].mxu1  ;;  %v1658_v26 = vpack.c.bf16 %v1084_v23, %v1083_v22 }
 0x263   : > { %v479_v29 = vsel %vm404_vm2, %v476_v27, -inf  ;;  %1659 = vmatpush3.bf16.msra.mxu0 %v1658_v26 }
 0x264   : > { %v641_v30 = vpop.f32.mrb[0].mxu0  ;;  %480 = vmax.xlane.f32.xlu1 %v479_v29  ;;  %1666 = vmatprep.subr.bf16.mxu0 %v1860_v0 }
 0x265   : > { %v642_v31 = vadd.f32 %v641_v30, %v399_v25  ;;  %v1581_v32 = vpop.f32.mrb[1].mxu0 }
 0x267   : > { %v645_v33 = vsel %vm404_vm2, %v642_v31, -inf }
 0x268   : > { %646 = vmax.xlane.f32.xlu0 %v645_v33  ;;  %v812_v34 = vpop.f32.mrb[2].mxu0 }
 0x269   : > { %v813_v35 = vadd.f32 %v812_v34, %v399_v25  ;;  %v1591_v36 = vpop.f32.mrb[3].mxu0 }
 0x26b   : > { %v816_v37 = vsel %vm404_vm2, %v813_v35, -inf }
 0x26c   : > { %817 = vmax.xlane.f32.xlu0 %v816_v37  ;;  %v983_v38 = vpop.f32.mrb[4].mxu0 }
 0x26d   : > { %v1601_v39 = vpop.f32.mrb[5].mxu0  ;;  %v984_v40 = vadd.f32 %v983_v38, %v399_v25 }
 0x26f   : > { %v987_v41 = vsel %vm404_vm2, %v984_v40, -inf }
 0x275   : > { %654 = vrot.lane.b32.xlu1 %v2062_v11, %s1870_s9  ;;  %s1791_s9 = scalar_lea.vmem %s2219_s17, 128 }
 0x276   : > { %p1792_p11 = scmp.ne.s32.totalorder %s2219_s17, %s1791_s9 }
 0x278   : > { %p1793_p13 = pnand %p1792_p11, %p2278_p12 }
 0x27a   : > { %p1794_p7 = pneg %p1793_p13 }
 0x282   : > { %488 = vrot.lane.b32.xlu0 %v2062_v11, %s1871_s16  ;;  %s1875_s16 = smov 16  }
 0x286   : > { %996 = vrot.lane.b32.xlu0 %v2062_v11, %s1872_s23  ;;  %s1876_s23 = smov 24  }
 0x299   : > { %988 = vmax.xlane.f32.xlu1 %v987_v41 }
 0x2aa   : > { %825 = vrot.lane.b32.xlu1 %v2062_v11, %s1873_s20 }
 0x2f1   : > { %v481_v42 = vpop.xlane.xlu1 %480 }
 0x2f2   : > { %v482_v43 = vsub.f32 %v476_v27, %v481_v42 }
 0x2f4   : > { %v483_v44 = vmul.f32 1.442695, %v482_v43 }
 0x2f5   : > { %v647_v45 = vpop.xlane.xlu0 %646  ;;  %v655_v53 = vpop.permute.xlu1 %654 }
 0x2f6   : > { %1741 = vpow2.f32 %v483_v44  ;;  %v648_v46 = vsub.f32 %v642_v31, %v647_v45 }
 0x2f8   : > { %v649_v47 = vmul.f32 1.442695, %v648_v46  ;;  %v1191_v46 = vld [vmem:[%s2266_s4 + $0x8] sm:$0xff] }
 0x2f9   : > { %v818_v48 = vpop.xlane.xlu0 %817 }
 0x2fa   : > { %1743 = vpow2.f32 %v649_v47  ;;  %v819_v49 = vsub.f32 %v813_v35, %v818_v48  ;;  %v1502_v35 = vld [vmem:[%s2268_s6 + $0x2] ss:$0 sm:$0xff]  ;;  %v1193_v48 = vld [vmem:[%s2266_s4 + $0x18] sm:$0xff] }
 0x2fc   : > { %v820_v50 = vmul.f32 1.442695, %v819_v49 }
 0x2fd   : > { %v489_v51 = vpop.permute.xlu0 %488 }
 0x2fe   : > { %1745 = vpow2.f32 %v820_v50  ;;  %1573 = vmatpush3.msra.mxu1 %v489_v51  ;;  %v1273_v50 = vld [vmem:[%s2267_s5] sm:$0xff]  ;;  %v1274_v51 = vld [vmem:[%s2267_s5 + $0x8] sm:$0xff] }
 0x2ff   : > { %1582 = vmatprep.subr.mxu1 %v1862_v1 }
 0x300   : > { %v1742_v52 = vpop.eup %1741 }
 0x301   : > { %1575 = vmatmul.mubr.msk.f32.vlgmr.msra.gmra.mrb[4].mxu1 %vm404_vm2, %v1742_v52  ;;  %v485_v58 = vsel %vm404_vm2, %v1742_v52, 0.0  ;;  %v997_v63 = vpop.permute.xlu0 %996  ;;  %v1275_v52 = vld [vmem:[%s2267_s5 + $0x10] sm:$0xff] }
 0x302   : > { %1583 = vmatpush3.msra.mxu1 %v655_v53  ;;  %1584 = vmatprep.mubr.msk.f32.mxu1 %vm1861_vm0, %v1862_v1  ;;  %v1667_v53 = vpack.c.bf16 %v1274_v51, %v1273_v50 }
 0x303   : > { %1592 = vmatprep.subr.mxu1 %v1862_v1 }
 0x304   : > { %v1744_v54 = vpop.eup %1743 }
 0x305   : > { %1585 = vmatmul.mubr.msk.f32.vlgmr.msra.gmra.mrb[6].mxu1 %vm404_vm2, %v1744_v54  ;;  %v651_v55 = vsel %vm404_vm2, %v1744_v54, 0.0  ;;  %v1276_v54 = vld [vmem:[%s2267_s5 + $0x18] sm:$0xff] }
 0x306   : > { %652 = vadd.xlane.f32.xlu1 %v651_v55  ;;  %1594 = vmatprep.mubr.msk.f32.mxu1 %vm1861_vm0, %v1862_v1  ;;  %v1670_v55 = vpack.c.bf16 %v1276_v54, %v1275_v52 }
 0x308   : > { %v1746_v56 = vpop.eup %1745 }
 0x309   : > { %v822_v57 = vsel %vm404_vm2, %v1746_v56, 0.0 }
 0x30a   : > { %823 = vadd.xlane.f32.xlu0 %v822_v57  ;;  %486 = vadd.xlane.f32.xlu1 %v485_v58  ;;  %v1278_v57 = vld [vmem:[%s2267_s5 + $0x28] sm:$0xff] }
 0x326   : > { %v989_v59 = vpop.xlane.xlu1 %988 }
 0x327   : > { %v990_v60 = vsub.f32 %v984_v40, %v989_v59 }
 0x329   : > { %v991_v61 = vmul.f32 1.442695, %v990_v60 }
 0x32a   : > { %v826_v62 = vpop.permute.xlu1 %825 }
 0x32b   : > { %1747 = vpow2.f32 %v991_v61  ;;  %1593 = vmatpush3.msra.mxu1 %v826_v62 }
 0x32c   : > { %1595 = vmatmul.mubr.msk.f32.vlgmr.msra.gmra.mrb[8].mxu1 %vm404_vm2, %v1746_v56  ;;  %1602 = vmatprep.subr.mxu1 %v1862_v1  ;;  %v1277_v56 = vld [vmem:[%s2267_s5 + $0x20] sm:$0xff] }
 0x32d   : > { %1603 = vmatpush3.msra.mxu1 %v997_v63  ;;  %1604 = vmatprep.mubr.msk.f32.mxu1 %vm1861_vm0, %v1862_v1  ;;  %v1673_v58 = vpack.c.bf16 %v1278_v57, %v1277_v56  ;;  %v1504_v63 = vld [vmem:[%s2268_s6 + $0x3] ss:$0 sm:$0xff] }
 0x32e   : > { %1660 = vmatprep.subr.bf16.mxu1 %v1860_v0 }
 0x335   : > { %v1748_v2 = vpop.eup %1747 }
 0x336   : > { %1605 = vmatmul.mubr.msk.f32.vlgmr.msra.gmra.mrb[10].mxu1 %vm404_vm2, %v1748_v2  ;;  %v993_v3 = vsel %vm404_vm2, %v1748_v2, 0.0 }
 0x337   : > { %994 = vadd.xlane.f32.xlu0 %v993_v3  ;;  %1626 = vmatprep.mubr.msk.f32.mxu1 %vm1861_vm0, %v1862_v1  ;;  %v1505_v3 = vld [vmem:[%s2268_s6 + $0x4] ss:$0 sm:$0xff] }
 0x393   : > { %v653_v4 = vpop.xlane.xlu1 %652 }
 0x397   : > { %v487_v5 = vpop.xlane.xlu1 %486  ;;  %v824_v15 = vpop.xlane.xlu0 %823 }
 0x398   : > { %1749 = vrcp.f32 %v487_v5 }
 0x399   : > { %1751 = vrcp.f32 %v653_v4 }
 0x39a   : > { %1753 = vrcp.f32 %v824_v15 }
 0x3a2   : > { %v1750_v6 = vpop.eup %1749 }
 0x3a3   : > { %v1752_v11 = vpop.eup %1751 }
 0x3a4   : > { %v1754_v19 = vpop.eup %1753 }
 0x3c4   : > { %v995_v16 = vpop.xlane.xlu0 %994 }
 0x3c5   : > { %1755 = vrcp.f32 %v995_v16 }
 0x3cf   : > { %v1756_v27 = vpop.eup %1755 }
 0x3d4   : > { %v560_v7 = vpop.f32.mrb[4].mxu1 }
 0x3d5   : > { %v565_v9 = vmul.f32 %v1750_v6, %v560_v7  ;;  %v1576_v10 = vpop.f32.mrb[5].mxu1  ;;  %v1280_v6 = vld [vmem:[%s2267_s5 + $0x38] sm:$0xff] }
 0x3d7   : > { %566 = vst.msk [vmem:[#allocation2] sm:$0xff] %vm404_vm2, %v565_v9  ;;  %v1506_v9 = vld [vmem:[%s2268_s6 + $0x1] ss:$0 sm:$0xff] }
 0x3d8   : > { %v726_v12 = vpop.f32.mrb[6].mxu1 }
 0x3d9   : > { %v731_v13 = vmul.f32 %v1752_v11, %v726_v12  ;;  %v1586_v14 = vpop.f32.mrb[7].mxu1 }
 0x3da   : > { %v1508_v14 = vld [vmem:[%s2268_s6 + $0x5] ss:$0 sm:$0xff] }
 0x3db   : > { %733 = vrot.lane.b32.xlu0 %v731_v13, %s1874_s22 }
 0x3ff   : > { %v897_v20 = vpop.f32.mrb[8].mxu1 }
 0x400   : > { %v902_v24 = vmul.f32 %v1754_v19, %v897_v20  ;;  %v1596_v25 = vpop.f32.mrb[9].mxu1 }
 0x402   : > { %904 = vrot.lane.b32.xlu1 %v902_v24, %s1875_s16  ;;  %s1797_s16 = scalar_lea.vmem %s1796_s11, 256 }
 0x403   : > { %p1799_p2 = scmp.lt.s32.totalorder %s1797_s16, %s1791_s9 }
 0x405   : > { %p1800_p4 = por %p1799_p2, %p1798_p10 }
 0x407   : > { %p1801_p5 = pnand %p1800_p4, %p1794_p7 }
 0x409   : > { %v1068_v28 = vpop.f32.mrb[10].mxu1 }
 0x40a   : > { %v1073_v29 = vmul.f32 %v1756_v27, %v1068_v28  ;;  %v1606_v30 = vpop.f32.mrb[11].mxu1 }
 0x40c   : > { %1075 = vrot.lane.b32.xlu1 %v1073_v29, %s1876_s23  ;;  %v1510_v29 = vld [vmem:[%s2268_s6 + $0x6] ss:$0 sm:$0xff] }
 0x44d   : > { %v734_v31 = vpop.permute.xlu0 %733 }
 0x44e   : > { %737 = vst.msk [vmem:[#allocation2] sm:$0xff] %vm736_vm4, %v734_v31  ;;  %v1511_v31 = vld [vmem:[%s2268_s6 + $0x7] ss:$0 sm:$0xff] }
 0x474   : > { %v905_v32 = vpop.permute.xlu1 %904 }
 0x475   : > { %908 = vst.msk [vmem:[#allocation2] sm:$0xff] %vm907_vm5, %v905_v32 }
 0x47e   : > { %v1076_v33 = vpop.permute.xlu1 %1075 }
 0x47f   : > { %1079 = vst.msk [vmem:[#allocation2] sm:$0xff] %vm1078_vm6, %v1076_v33 }
 0x486   : > { %v1080_v34 = vld [vmem:[#allocation2] sm:$0xff] }
 0x487   : > { %1616 = vmatmul.mubr.msk.f32.vlgmr.msra.gmra.mrb[6].mxu0 %vm318_vm1, %v1080_v34 }
 0x488   : > { %1645 = vmatprep.mubr.msk.f32.mxu0 %vm1861_vm0, %v1862_v1  ;;  %v1190_v1 = vld [vmem:[%s2266_s4] sm:$0xff]  ;;  %1668 = vmatpush3.bf16.msra.mxu0 %v1667_v53 }
 0x489   : > { %v1661_v47 = vpack.c.bf16 %v1191_v46, %v1190_v1  ;;  %1669 = vmatprep.subr.bf16.mxu0 %v1860_v0 }
 0x48b   : > { %1662 = vmatpush3.bf16.msra.mxu1 %v1661_v47 }
 0x48c   : > { %1663 = vmatprep.subr.bf16.mxu1 %v1860_v0  ;;  %1671 = vmatpush3.bf16.msra.mxu0 %v1670_v55 }
 0x48d   : > { %1672 = vmatprep.subr.bf16.mxu0 %v1860_v0 }
 0x490   : > { %1674 = vmatpush3.bf16.msra.mxu0 %v1673_v58 }
 0x491   : > { %1675 = vmatprep.subr.bf16.mxu0 %v1860_v0  ;;  %v1279_v0 = vld [vmem:[%s2267_s5 + $0x30] sm:$0xff] }
 0x492   : > { %v1676_v7 = vpack.c.bf16 %v1280_v6, %v1279_v0 }
 0x494   : > { %1677 = vmatpush3.bf16.msra.mxu0 %v1676_v7 }
 0x55a   : > { %v1159_v36 = vpop.f32.mrb[6].mxu0 }
 0x55b   : > { %v1160_v37 = vadd.f32 %v1502_v35, %v1159_v36  ;;  %v1617_v38 = vpop.f32.mrb[7].mxu0 }
 0x55d   : > { %v1163_v39 = vadd.f32 %v1160_v37, %v2052_v8  ;;  %v1192_v8 = vld [vmem:[%s2266_s4 + $0x10] sm:$0xff] }
 0x55e   : > { %v1664_v49 = vpack.c.bf16 %v1193_v48, %v1192_v8 }
 0x55f   : > { %v1164_v40 = vsel %vm318_vm1, %v1163_v39, 0.0 }
 0x560   : > { %1165 = vadd.xlane.f32.xlu0 %v1164_v40  ;;  %1665 = vmatpush3.bf16.msra.mxu1 %v1664_v49 }
 0x5ed   : > { %v1166_v41 = vpop.xlane.xlu0 %1165 }
 0x5ee   : > { %v1168_v42 = vmul.f32 0.03125, %v1166_v41 }
 0x5f0   : > { %v1169_v43 = vsub.f32 %v1163_v39, %v1168_v42 }
 0x5f2   : > { %v1170_v44 = vmul.f32 %v1169_v43, %v1169_v43 }
 0x5f4   : > { %v1171_v45 = vsel %vm318_vm1, %v1170_v44, 0.0 }
 0x5f5   : > { %1172 = vadd.xlane.f32.xlu1 %v1171_v45 }
 0x682   : > { %v1173_v59 = vpop.xlane.xlu1 %1172 }
 0x683   : > { %v1174_v60 = vmul.f32 0.03125, %v1173_v59 }
 0x685   : > { %v1175_v61 = vadd.f32 1e-05, %v1174_v60 }
 0x687   : > { %1757 = vrsqrt.f32 %v1175_v61 }
 0x691   : > { %v1758_v62 = vpop.eup %1757 }
 0x692   : > { %v1177_v2 = vmul.f32 %v1758_v62, %v1169_v43 }
 0x694   : > { %v1183_v4 = vmul.f32 %v1504_v63, %v1177_v2 }
 0x696   : > { %v1189_v5 = vadd.f32 %v1505_v3, %v1183_v4 }
 0x698   : > { %1627 = vmatmul.mubr.msk.f32.vlgmr.msra.gmra.mrb[12].mxu1 %vm318_vm1, %v1189_v5 }
 0x76b   : > { %v1268_v10 = vpop.f32.mrb[12].mxu1 }
 0x76c   : > { %v1269_v11 = vadd.f32 %v1506_v9, %v1268_v10  ;;  %v1628_v12 = vpop.f32.mrb[13].mxu1 }
 0x76e   : > { %v1272_v13 = vmax.f32 %v1269_v11, 0.0 }
 0x770   : > { %1646 = vmatmul.mubr.msk.f32.vlgmr.msra.gmra.mrb[8].mxu0 %vm1286_vm7, %v1272_v13 }
 0x843   : > { %v1356_v15 = vpop.f32.mrb[8].mxu0 }
 0x844   : > { %v1357_v16 = vadd.f32 %v1508_v14, %v1356_v15  ;;  %v1647_v17 = vpop.f32.mrb[9].mxu0 }
 0x846   : > { %v1360_v18 = vadd.f32 %v1357_v16, %v1189_v5 }
 0x848   : > { %v1361_v19 = vsel %vm318_vm1, %v1360_v18, 0.0 }
 0x849   : > { %1362 = vadd.xlane.f32.xlu0 %v1361_v19 }
 0x8d6   : > { %v1363_v20 = vpop.xlane.xlu0 %1362 }
 0x8d7   : > { %v1364_v21 = vmul.f32 0.03125, %v1363_v20 }
 0x8d9   : > { %v1365_v22 = vsub.f32 %v1360_v18, %v1364_v21 }
 0x8db   : > { %v1366_v23 = vmul.f32 %v1365_v22, %v1365_v22 }
 0x8dd   : > { %v1367_v24 = vsel %vm318_vm1, %v1366_v23, 0.0 }
 0x8de   : > { %1368 = vadd.xlane.f32.xlu0 %v1367_v24 }
 0x96b   : > { %v1369_v25 = vpop.xlane.xlu0 %1368 }
 0x96c   : > { %v1370_v26 = vmul.f32 0.03125, %v1369_v25 }
 0x96e   : > { %v1371_v27 = vadd.f32 1e-05, %v1370_v26 }
 0x970   : > { %1759 = vrsqrt.f32 %v1371_v27 }
 0x97a   : > { %v1760_v28 = vpop.eup %1759 }
 0x97b   : > { %v1373_v30 = vmul.f32 %v1760_v28, %v1365_v22 }
 0x97d   : > { %v1379_v32 = vmul.f32 %v1510_v29, %v1373_v30 }
 0x97f   : > { %v1385_v33 = vadd.f32 %v1511_v31, %v1379_v32 }
 0x981   : > { %1386 = vst.msk [vmem:[%s304_s12] sm:$0xff] %vm318_vm1, %v1385_v33 }
 0x982   : > { %1804 = shalt.err (!%p1801_p5)
}
 0x983   : > { %s1805_s8 = scalar_lea.hbm %s2217_s19, 128  ;;  %s1809_s22 = scalar_lea.hbm %s2269_s7, 256 }
 0x984   : > { %p1806_p8 = scmp.ne.s32.totalorder %s2217_s19, %s1805_s8  ;;  %p1810_p1 = scmp.lt.u32.totalorder %s2217_s19, %s2269_s7 }
 0x985   : > { %p1811_p3 = scmp.lt.u32.totalorder %s1809_s22, %s1805_s8  ;;  %p1813_p11 = scmp.lt.u32.totalorder %s1805_s8, %s2217_s19 }
 0x986   : > { %p1807_p9 = pnand %p1806_p8, %p2278_p12 }
 0x987   : > { %p1812_p6 = por %p1811_p3, %p1810_p1 }
 0x988   : > { %p1808_p0 = pneg %p1807_p9 }
 0x989   : > { %p1814_p13 = por %p1813_p11, %p1812_p6 }
 0x98b   : > { %p1815_p7 = pnand %p1814_p13, %p1808_p0 }
 0x98d   : > { %1818 = shalt.err (!%p1815_p7)
}
 0x98e   : > { %1680 = dma.vmem_to_hbm [thread:$0]  (%p2278_p12), %s2219_s17, 128, %s2217_s19, %s1388_s21  }
 0x98f PF: > { %s1413_s18 = sand.u32 1, %s1845_s24   ;;  %p2279_p10 = scmp.ne.s32.totalorder %s2274_s14, 0 }
 0x990   : > { %p2280_p2 = scmp.ge.s32.totalorder %s1857_s27, 2  ;;  %s1414_s15 = scalar_lea.sflag [#allocation5], %s1413_s18 }
 0x992   : > { %p1687_p4 = pnand %p2280_p2, %p2279_p10 }
 0x994   : > { %1840 = dma.done.wait (!%p1687_p4), %s1414_s15, 128  }
 0x995   : > { %1842 = vsyncadd (!%p1687_p4), %s1414_s15, 4294967168  ;;  %p20_p5 = scmp.ge.s32.totalorder %s1943_s30, 4   ;;  %s2281_s24 = smov %s1849_s25 }
 0x996   : > { %s2282_s25 = smov %s1853_s26  ;;  %s2283_s26 = smov %s1955_s10 }
 0x997   : > { %s2284_s27 = smov %s1943_s30  ;;  %22 = sbr.rel (!%p20_p5) target bundleno = 5 (0x5), region = 96 }
 0x99e   :  { %1419 = vsyncpa [#allocation4], 1 }
 0x99f   :  { %1421 = vsyncpa [#allocation4 + $0x1], 1 }
 0x9a0   :  { %1422 = vsyncpa [#allocation5], 1 }
 0x9a1   :  { %1424 = vsyncpa [#allocation5 + $0x1], 1 }

</bundles_post_ra>
